<compile_context>
chip_gen: v7x
topology: tpu7x:2x2x1
jax: 0.10.0
libtpu: 0.0.40
codegen_flags: <defaults>
</compile_context>

<pallas_src>
import functools

import jax
import jax.numpy as jnp
import numpy as np
from jax.experimental import pallas as pl
from jax.experimental.pallas import tpu as pltpu


def _ceil_to(v: int, m: int) -> int:
    return ((v + m - 1) // m) * m


# --------------------------------------------------------------------------- #
# Kernel
# --------------------------------------------------------------------------- #
def _make_kernel(num_hidden: int):
    """Fused MLP forward for one (TILE_B, :) batch tile.

    Operands:
      xy_ref    (TILE_B, Fxy)  bf16   concat(x, y), zero padded to Fxy
      yhat_ref  (TILE_B, Fy)   bf16   y_hat, zero padded to Fy
      w0_ref    (Fxy, P)       bf16   input Linear
      wsq_ref   (num_hidden+3, P, P) bf16  [hidden..., out, reduce_h, final]
      wredy_ref (Fy, P)        bf16   y_hat half of the reduce Linear
      b_ref     (num_hidden+4, P) f32 [b0, b_hidden..., b_out, b_red, b_fin]
      out_ref   (TILE_B, P)    f32    sigmoid output; column 0 is the real value
    """

    def kernel(xy_ref, yhat_ref, w0_ref, wsq_ref, wredy_ref, b_ref, out_ref):
        f32 = jnp.float32
        bf16 = jnp.bfloat16
        biases = b_ref[...]  # (num_hidden + 4, P), tiny

        # ---- mlp: Linear(x_dim + y_dim, hidden) + ReLU -------------------
        h = jnp.dot(xy_ref[...], w0_ref[...], preferred_element_type=f32)
        h = jnp.maximum(h + biases[0:1, :], 0.0)

        # ---- mlp: (layer_number - 3) x [Linear(hidden, hidden) + ReLU] ---
        for l in range(num_hidden):
            h = jnp.dot(h.astype(bf16), wsq_ref[l], preferred_element_type=f32)
            h = jnp.maximum(h + biases[l + 1:l + 2, :], 0.0)

        # ---- mlp: Linear(hidden, comb) + ReLU -----------------------------
        h = jnp.dot(h.astype(bf16), wsq_ref[num_hidden], preferred_element_type=f32)
        h = jnp.maximum(h + biases[num_hidden + 1:num_hidden + 2, :], 0.0)

        # ---- yhat_comb: Linear(comb + y_dim, comb) + ReLU (split concat) --
        r = (
            jnp.dot(h.astype(bf16), wsq_ref[num_hidden + 1], preferred_element_type=f32)
            + jnp.dot(yhat_ref[...], wredy_ref[...], preferred_element_type=f32)
        )
        r = jnp.maximum(r + biases[num_hidden + 2:num_hidden + 3, :], 0.0)

        # ---- yhat_comb: Linear(comb, 1) + Sigmoid -------------------------
        # w_fin is padded to (P, P) with zeros in columns 1..P-1, so the full
        # (TILE_B, P) tile is written lane-dense (unmasked vst); column 0 holds
        # the true selection probability.
        logit = jnp.dot(r.astype(bf16), wsq_ref[num_hidden + 2], preferred_element_type=f32)
        logit = logit + biases[num_hidden + 3:num_hidden + 4, :]
        out_ref[...] = jax.nn.sigmoid(logit).astype(out_ref.dtype)

    return kernel


# --------------------------------------------------------------------------- #
# Parameter init / packing
# --------------------------------------------------------------------------- #
def init_params(key, x_dim, y_dim, hidden_dim, layer_number, comb_dim):
    """PyTorch-Linear-style init. W shaped (in, out), b shaped (1, out).

    Layer order: input, hidden*(layer_number-3), out, reduce, final.
    """
    dims = [(x_dim + y_dim, hidden_dim)]
    for _ in range(int(layer_number - 3)):
        dims.append((hidden_dim, hidden_dim))
    dims.append((hidden_dim, comb_dim))
    dims.append((comb_dim + y_dim, comb_dim))
    dims.append((comb_dim, 1))

    params = []
    for fan_in, fan_out in dims:
        key, kw, kb = jax.random.split(key, 3)
        bound = 1.0 / float(np.sqrt(fan_in))
        w = jax.random.uniform(kw, (fan_in, fan_out), jnp.float32, -bound, bound)
        b = jax.random.uniform(kb, (1, fan_out), jnp.float32, -bound, bound)
        params.append((w, b))
    return params


def pack_params(params, *, x_dim, y_dim, hidden_dim, comb_dim):
    """One-time padding / stacking / bf16 cast of the weights (done outside the hot path)."""
    num_hidden = len(params) - 4
    P = _ceil_to(max(hidden_dim, comb_dim, 1), 128)
    f_xy = _ceil_to(x_dim + y_dim, 128)
    f_y = _ceil_to(y_dim, 128)

    def pad_w(w, rows, cols):
        return jnp.pad(w, ((0, rows - w.shape[0]), (0, cols - w.shape[1])))

    def pad_b(b, cols):
        b = b.reshape(1, -1)
        return jnp.pad(b, ((0, 0), (0, cols - b.shape[1])))

    w0, b0 = params[0]
    w0_p = pad_w(w0, f_xy, P).astype(jnp.bfloat16)

    squares = []
    biases = [pad_b(b0, P)]
    for i in range(num_hidden):
        w, b = params[1 + i]
        squares.append(pad_w(w, P, P))
        biases.append(pad_b(b, P))
    w_out, b_out = params[1 + num_hidden]
    squares.append(pad_w(w_out, P, P))
    biases.append(pad_b(b_out, P))
    w_red, b_red = params[2 + num_hidden]
    squares.append(pad_w(w_red[:comb_dim, :], P, P))
    biases.append(pad_b(b_red, P))
    wredy_p = pad_w(w_red[comb_dim:, :], f_y, P).astype(jnp.bfloat16)
    w_fin, b_fin = params[3 + num_hidden]
    squares.append(pad_w(w_fin, P, P))
    biases.append(pad_b(b_fin, P))

    wsq = jnp.stack(squares, axis=0).astype(jnp.bfloat16)          # (num_hidden+3, P, P)
    bstack = jnp.concatenate(biases, axis=0).astype(jnp.float32)   # (num_hidden+4, P)
    return {"w0": w0_p, "wsq": wsq, "wredy": wredy_p, "b": bstack}


# --------------------------------------------------------------------------- #
# Forward
# --------------------------------------------------------------------------- #
@functools.partial(jax.jit, static_argnames=("tile_b",))
def dve_forward(x, y, y_hat, packed, tile_b=512):
    """Forward pass of DataValueEstimatorRL via one batch-tiled Pallas kernel."""
    w0, wsq, wredy, bstack = packed["w0"], packed["wsq"], packed["wredy"], packed["b"]
    f_xy, P = w0.shape
    f_y = wredy.shape[0]
    num_hidden = wsq.shape[0] - 3
    nb = bstack.shape[0]

    n = x.shape[0]
    x2 = x.reshape(n, -1).astype(jnp.float32)
    y2 = y.reshape(n, -1).astype(jnp.float32)
    yh2 = y_hat.reshape(n, -1).astype(jnp.float32)
    xy = jnp.concatenate([x2, y2], axis=1)             # wrapper-side concat

    tb = min(tile_b, _ceil_to(n, 8))                   # batch tile (rows)
    n_pad = _ceil_to(n, tb)

    xy_p = jnp.pad(xy, ((0, n_pad - n), (0, f_xy - xy.shape[1]))).astype(jnp.bfloat16)
    yh_p = jnp.pad(yh2, ((0, n_pad - n), (0, f_y - yh2.shape[1]))).astype(jnp.bfloat16)

    grid = (n_pad // tb,)

    flops = 2 * n_pad * (f_xy * P + (num_hidden + 3) * P * P + f_y * P)
    bytes_accessed = (
        n_pad * f_xy * 2 + n_pad * f_y * 2          # activation inputs (bf16)
        + w0.size * 2 + wsq.size * 2 + wredy.size * 2 + bstack.size * 4
        + n_pad * P * 4                             # output (f32)
    )

    kernel = _make_kernel(num_hidden)
    out = pl.pallas_call(
        kernel,
        out_shape=jax.ShapeDtypeStruct((n_pad, P), jnp.float32),
        grid=grid,
        in_specs=[
            pl.BlockSpec((tb, f_xy), lambda i: (i, 0)),             # xy tile
            pl.BlockSpec((tb, f_y), lambda i: (i, 0)),              # y_hat tile
            pl.BlockSpec((f_xy, P), lambda i: (0, 0)),              # w0 (resident)
            pl.BlockSpec((num_hidden + 3, P, P), lambda i: (0, 0, 0)),  # square weights
            pl.BlockSpec((f_y, P), lambda i: (0, 0)),               # reduce y_hat weight
            pl.BlockSpec((nb, P), lambda i: (0, 0)),                # biases
        ],
        out_specs=pl.BlockSpec((tb, P), lambda i: (i, 0)),
        compiler_params=pltpu.CompilerParams(dimension_semantics=("parallel",)),
        cost_estimate=pl.CostEstimate(
            flops=flops, transcendentals=n_pad * P, bytes_accessed=bytes_accessed
        ),
    )(xy_p, yh_p, w0, wsq, wredy, bstack)

    return out[:n, :1]


# --------------------------------------------------------------------------- #
# References
# --------------------------------------------------------------------------- #
def _reference_forward_f32(x, y, y_hat, params, comb_dim):
    """Pure-f32 JAX reference mirroring the PyTorch module exactly."""
    n = x.shape[0]
    x = x.reshape(n, -1)
    y = y.reshape(n, -1)
    y_hat = y_hat.reshape(n, -1)
    num_hidden = len(params) - 4

    h = jnp.concatenate([x, y], axis=1)
    w, b = params[0]
    h = jax.nn.relu(h @ w + b)
    for i in range(num_hidden):
        w, b = params[1 + i]
        h = jax.nn.relu(h @ w + b)
    w, b = params[1 + num_hidden]
    h = jax.nn.relu(h @ w + b)
    h = jnp.concatenate([h, y_hat], axis=1)
    w, b = params[2 + num_hidden]
    h = jax.nn.relu(h @ w + b)
    w, b = params[3 + num_hidden]
    return jax.nn.sigmoid(h @ w + b)


def _reference_forward_bf16(x, y, y_hat, params, comb_dim):
    """Reference that mirrors the kernel's bf16 matmul operands + f32 accumulation."""
    def bf(a):
        return a.astype(jnp.bfloat16).astype(jnp.float32)

    n = x.shape[0]
    xy = bf(jnp.concatenate([x.reshape(n, -1), y.reshape(n, -1)], axis=1))
    yh = bf(y_hat.reshape(n, -1))
    num_hidden = len(params) - 4

    w, b = params[0]
    h = jax.nn.relu(xy @ bf(w) + b)
    for i in range(num_hidden):
        w, b = params[1 + i]
        h = jax.nn.relu(bf(h) @ bf(w) + b)
    w, b = params[1 + num_hidden]
    h = jax.nn.relu(bf(h) @ bf(w) + b)
    w, b = params[2 + num_hidden]
    r = jax.nn.relu(bf(h) @ bf(w[:comb_dim, :]) + yh @ bf(w[comb_dim:, :]) + b)
    w, b = params[3 + num_hidden]
    return jax.nn.sigmoid(bf(r) @ bf(w) + b)


# --------------------------------------------------------------------------- #
# Test
# --------------------------------------------------------------------------- #
if __name__ == "__main__":
    x_dim = 16
    y_dim = 4
    hidden_dim = 32
    layer_number = 5   # -> 2 hidden Linear(hidden, hidden) layers
    comb_dim = 10

    key = jax.random.PRNGKey(0)
    kp, kdata = jax.random.split(key)
    params = init_params(kp, x_dim, y_dim, hidden_dim, layer_number, comb_dim)
    packed = pack_params(
        params, x_dim=x_dim, y_dim=y_dim, hidden_dim=hidden_dim, comb_dim=comb_dim
    )

    # Small-shape check (single grid step) + multi-tile check (grid + row padding).
    for batch, tb in ((8, 512), (300, 128)):
        kx, ky, kyh, kdata = jax.random.split(kdata, 4)
        x = jax.random.normal(kx, (batch, x_dim), jnp.float32)
        y = jax.random.normal(ky, (batch, y_dim), jnp.float32)
        y_hat = jax.random.normal(kyh, (batch, y_dim), jnp.float32)

        out = dve_forward(x, y, y_hat, packed, tile_b=tb)
        out = jax.block_until_ready(out)
        assert out.shape == (batch, 1)

        ref_bf = _reference_forward_bf16(x, y, y_hat, params, comb_dim)
        ref_f32 = _reference_forward_f32(x, y, y_hat, params, comb_dim)
        np.testing.assert_allclose(np.asarray(out), np.asarray(ref_bf), rtol=1e-3, atol=1e-3)
        np.testing.assert_allclose(np.asarray(out), np.asarray(ref_f32), rtol=0, atol=5e-2)

    print("KERNEL_OK")
</pallas_src>

<mosaic_0001>
module attributes {stable_mosaic.version = 11 : i64} {
  func.func @kernel(%arg0: i32, %arg1: memref<8x128xbf16, #tpu.memory_space<vmem>>, %arg2: memref<8x128xbf16, #tpu.memory_space<vmem>>, %arg3: memref<128x128xbf16, #tpu.memory_space<vmem>>, %arg4: memref<5x128x128xbf16, #tpu.memory_space<vmem>>, %arg5: memref<128x128xbf16, #tpu.memory_space<vmem>>, %arg6: memref<6x128xf32, #tpu.memory_space<vmem>>, %arg7: memref<8x128xf32, #tpu.memory_space<vmem>>) attributes {dimension_semantics = [#tpu.dimension_semantics<parallel>], iteration_bounds = array<i64: 1>, scalar_prefetch = 0 : i64, scratch_operands = 0 : i64, tpu.core_type = #tpu.core_type<tc>, window_params = [{transform_indices = @transform_0, window_bounds = array<i64: 8, 128>}, {transform_indices = @transform_1, window_bounds = array<i64: 8, 128>}, {pipeline_mode = #tpu.pipeline_mode<synchronous>, transform_indices = @transform_2, window_bounds = array<i64: 128, 128>}, {pipeline_mode = #tpu.pipeline_mode<synchronous>, transform_indices = @transform_3, window_bounds = array<i64: 5, 128, 128>}, {pipeline_mode = #tpu.pipeline_mode<synchronous>, transform_indices = @transform_4, window_bounds = array<i64: 128, 128>}, {pipeline_mode = #tpu.pipeline_mode<synchronous>, transform_indices = @transform_5, window_bounds = array<i64: 6, 128>}, {transform_indices = @transform_6, window_bounds = array<i64: 8, 128>}]} {
    %c0 = arith.constant 0 : index
    %c0_0 = arith.constant 0 : index
    %0 = vector.load %arg6[%c0, %c0_0] : memref<6x128xf32, #tpu.memory_space<vmem>>, vector<6x128xf32>
    %c0_1 = arith.constant 0 : index
    %c0_2 = arith.constant 0 : index
    %1 = vector.load %arg1[%c0_1, %c0_2] : memref<8x128xbf16, #tpu.memory_space<vmem>>, vector<8x128xbf16>
    %c0_3 = arith.constant 0 : index
    %c0_4 = arith.constant 0 : index
    %2 = vector.load %arg3[%c0_3, %c0_4] : memref<128x128xbf16, #tpu.memory_space<vmem>>, vector<128x128xbf16>
    %cst = arith.constant dense<0.000000e+00> : vector<8x128xf32>
    %3 = tpu.matmul %1, %2, %cst {dimension_numbers = #tpu.dot_dimension_numbers<[1], [0], [0], [1], [0, 0, 1, 1], [], []>} : vector<8x128xbf16>, vector<128x128xbf16>, vector<8x128xf32> -> vector<8x128xf32>
    %4 = vector.extract_strided_slice %0 {offsets = [0, 0], sizes = [1, 128], strides = [1, 1]} : vector<6x128xf32> to vector<1x128xf32>
    %5 = vector.broadcast %4 : vector<1x128xf32> to vector<8x128xf32>
    %6 = arith.addf %3, %5 : vector<8x128xf32>
    %cst_5 = arith.constant 0.000000e+00 : f32
    %7 = vector.broadcast %cst_5 : f32 to vector<8x128xf32>
    %8 = arith.maximumf %6, %7 : vector<8x128xf32>
    %9 = arith.truncf %8 : vector<8x128xf32> to vector<8x128xbf16>
    %c0_6 = arith.constant 0 : index
    %c0_7 = arith.constant 0 : index
    %c0_8 = arith.constant 0 : index
    %10 = vector.load %arg4[%c0_6, %c0_7, %c0_8] : memref<5x128x128xbf16, #tpu.memory_space<vmem>>, vector<1x128x128xbf16>
    %11 = vector.shape_cast %10 : vector<1x128x128xbf16> to vector<128x128xbf16>
    %cst_9 = arith.constant dense<0.000000e+00> : vector<8x128xf32>
    %12 = tpu.matmul %9, %11, %cst_9 {dimension_numbers = #tpu.dot_dimension_numbers<[1], [0], [0], [1], [0, 0, 1, 1], [], []>} : vector<8x128xbf16>, vector<128x128xbf16>, vector<8x128xf32> -> vector<8x128xf32>
    %13 = vector.extract_strided_slice %0 {offsets = [1, 0], sizes = [1, 128], strides = [1, 1]} : vector<6x128xf32> to vector<1x128xf32>
    %14 = vector.broadcast %13 : vector<1x128xf32> to vector<8x128xf32>
    %15 = arith.addf %12, %14 : vector<8x128xf32>
    %cst_10 = arith.constant 0.000000e+00 : f32
    %16 = vector.broadcast %cst_10 : f32 to vector<8x128xf32>
    %17 = arith.maximumf %15, %16 : vector<8x128xf32>
    %18 = arith.truncf %17 : vector<8x128xf32> to vector<8x128xbf16>
    %c1 = arith.constant 1 : index
    %c0_11 = arith.constant 0 : index
    %c0_12 = arith.constant 0 : index
    %19 = vector.load %arg4[%c1, %c0_11, %c0_12] : memref<5x128x128xbf16, #tpu.memory_space<vmem>>, vector<1x128x128xbf16>
    %20 = vector.shape_cast %19 : vector<1x128x128xbf16> to vector<128x128xbf16>
    %cst_13 = arith.constant dense<0.000000e+00> : vector<8x128xf32>
    %21 = tpu.matmul %18, %20, %cst_13 {dimension_numbers = #tpu.dot_dimension_numbers<[1], [0], [0], [1], [0, 0, 1, 1], [], []>} : vector<8x128xbf16>, vector<128x128xbf16>, vector<8x128xf32> -> vector<8x128xf32>
    %22 = vector.extract_strided_slice %0 {offsets = [2, 0], sizes = [1, 128], strides = [1, 1]} : vector<6x128xf32> to vector<1x128xf32>
    %23 = vector.broadcast %22 : vector<1x128xf32> to vector<8x128xf32>
    %24 = arith.addf %21, %23 : vector<8x128xf32>
    %cst_14 = arith.constant 0.000000e+00 : f32
    %25 = vector.broadcast %cst_14 : f32 to vector<8x128xf32>
    %26 = arith.maximumf %24, %25 : vector<8x128xf32>
    %27 = arith.truncf %26 : vector<8x128xf32> to vector<8x128xbf16>
    %c2 = arith.constant 2 : index
    %c0_15 = arith.constant 0 : index
    %c0_16 = arith.constant 0 : index
    %28 = vector.load %arg4[%c2, %c0_15, %c0_16] : memref<5x128x128xbf16, #tpu.memory_space<vmem>>, vector<1x128x128xbf16>
    %29 = vector.shape_cast %28 : vector<1x128x128xbf16> to vector<128x128xbf16>
    %cst_17 = arith.constant dense<0.000000e+00> : vector<8x128xf32>
    %30 = tpu.matmul %27, %29, %cst_17 {dimension_numbers = #tpu.dot_dimension_numbers<[1], [0], [0], [1], [0, 0, 1, 1], [], []>} : vector<8x128xbf16>, vector<128x128xbf16>, vector<8x128xf32> -> vector<8x128xf32>
    %31 = vector.extract_strided_slice %0 {offsets = [3, 0], sizes = [1, 128], strides = [1, 1]} : vector<6x128xf32> to vector<1x128xf32>
    %32 = vector.broadcast %31 : vector<1x128xf32> to vector<8x128xf32>
    %33 = arith.addf %30, %32 : vector<8x128xf32>
    %cst_18 = arith.constant 0.000000e+00 : f32
    %34 = vector.broadcast %cst_18 : f32 to vector<8x128xf32>
    %35 = arith.maximumf %33, %34 : vector<8x128xf32>
    %36 = arith.truncf %35 : vector<8x128xf32> to vector<8x128xbf16>
    %c3 = arith.constant 3 : index
    %c0_19 = arith.constant 0 : index
    %c0_20 = arith.constant 0 : index
    %37 = vector.load %arg4[%c3, %c0_19, %c0_20] : memref<5x128x128xbf16, #tpu.memory_space<vmem>>, vector<1x128x128xbf16>
    %38 = vector.shape_cast %37 : vector<1x128x128xbf16> to vector<128x128xbf16>
    %cst_21 = arith.constant dense<0.000000e+00> : vector<8x128xf32>
    %39 = tpu.matmul %36, %38, %cst_21 {dimension_numbers = #tpu.dot_dimension_numbers<[1], [0], [0], [1], [0, 0, 1, 1], [], []>} : vector<8x128xbf16>, vector<128x128xbf16>, vector<8x128xf32> -> vector<8x128xf32>
    %c0_22 = arith.constant 0 : index
    %c0_23 = arith.constant 0 : index
    %40 = vector.load %arg2[%c0_22, %c0_23] : memref<8x128xbf16, #tpu.memory_space<vmem>>, vector<8x128xbf16>
    %c0_24 = arith.constant 0 : index
    %c0_25 = arith.constant 0 : index
    %41 = vector.load %arg5[%c0_24, %c0_25] : memref<128x128xbf16, #tpu.memory_space<vmem>>, vector<128x128xbf16>
    %cst_26 = arith.constant dense<0.000000e+00> : vector<8x128xf32>
    %42 = tpu.matmul %40, %41, %cst_26 {dimension_numbers = #tpu.dot_dimension_numbers<[1], [0], [0], [1], [0, 0, 1, 1], [], []>} : vector<8x128xbf16>, vector<128x128xbf16>, vector<8x128xf32> -> vector<8x128xf32>
    %43 = arith.addf %39, %42 : vector<8x128xf32>
    %44 = vector.extract_strided_slice %0 {offsets = [4, 0], sizes = [1, 128], strides = [1, 1]} : vector<6x128xf32> to vector<1x128xf32>
    %45 = vector.broadcast %44 : vector<1x128xf32> to vector<8x128xf32>
    %46 = arith.addf %43, %45 : vector<8x128xf32>
    %cst_27 = arith.constant 0.000000e+00 : f32
    %47 = vector.broadcast %cst_27 : f32 to vector<8x128xf32>
    %48 = arith.maximumf %46, %47 : vector<8x128xf32>
    %49 = arith.truncf %48 : vector<8x128xf32> to vector<8x128xbf16>
    %c4 = arith.constant 4 : index
    %c0_28 = arith.constant 0 : index
    %c0_29 = arith.constant 0 : index
    %50 = vector.load %arg4[%c4, %c0_28, %c0_29] : memref<5x128x128xbf16, #tpu.memory_space<vmem>>, vector<1x128x128xbf16>
    %51 = vector.shape_cast %50 : vector<1x128x128xbf16> to vector<128x128xbf16>
    %cst_30 = arith.constant dense<0.000000e+00> : vector<8x128xf32>
    %52 = tpu.matmul %49, %51, %cst_30 {dimension_numbers = #tpu.dot_dimension_numbers<[1], [0], [0], [1], [0, 0, 1, 1], [], []>} : vector<8x128xbf16>, vector<128x128xbf16>, vector<8x128xf32> -> vector<8x128xf32>
    %53 = vector.extract_strided_slice %0 {offsets = [5, 0], sizes = [1, 128], strides = [1, 1]} : vector<6x128xf32> to vector<1x128xf32>
    %54 = vector.broadcast %53 : vector<1x128xf32> to vector<8x128xf32>
    %55 = arith.addf %52, %54 : vector<8x128xf32>
    %56 = arith.negf %55 : vector<8x128xf32>
    %57 = math.exp %56 : vector<8x128xf32>
    %cst_31 = arith.constant 1.000000e+00 : f32
    %58 = vector.broadcast %cst_31 : f32 to vector<8x128xf32>
    %59 = arith.addf %58, %57 : vector<8x128xf32>
    %60 = arith.divf %58, %59 : vector<8x128xf32>
    %c0_32 = arith.constant 0 : index
    %c0_33 = arith.constant 0 : index
    %61 = vector.load %arg7[%c0_32, %c0_33] : memref<8x128xf32, #tpu.memory_space<vmem>>, vector<8x128xf32>
    tpu.vector_store %arg7[%c0_32, %c0_33], %60 {strides = array<i32>} : memref<8x128xf32, #tpu.memory_space<vmem>>, vector<8x128xf32>,
    return
  }
  func.func @transform_0(%arg0: i32) -> (i32, i32) {
    %c0_i32 = arith.constant 0 : i32
    %c0_i32_0 = arith.constant 0 : i32
    return %arg0, %c0_i32 : i32, i32
  }
  func.func @transform_1(%arg0: i32) -> (i32, i32) {
    %c0_i32 = arith.constant 0 : i32
    %c0_i32_0 = arith.constant 0 : i32
    return %arg0, %c0_i32 : i32, i32
  }
  func.func @transform_2(%arg0: i32) -> (i32, i32) {
    %c0_i32 = arith.constant 0 : i32
    %c0_i32_0 = arith.constant 0 : i32
    %c0_i32_1 = arith.constant 0 : i32
    return %c0_i32, %c0_i32_0 : i32, i32
  }
  func.func @transform_3(%arg0: i32) -> (i32, i32, i32) {
    %c0_i32 = arith.constant 0 : i32
    %c0_i32_0 = arith.constant 0 : i32
    %c0_i32_1 = arith.constant 0 : i32
    %c0_i32_2 = arith.constant 0 : i32
    return %c0_i32, %c0_i32_0, %c0_i32_1 : i32, i32, i32
  }
  func.func @transform_4(%arg0: i32) -> (i32, i32) {
    %c0_i32 = arith.constant 0 : i32
    %c0_i32_0 = arith.constant 0 : i32
    %c0_i32_1 = arith.constant 0 : i32
    return %c0_i32, %c0_i32_0 : i32, i32
  }
  func.func @transform_5(%arg0: i32) -> (i32, i32) {
    %c0_i32 = arith.constant 0 : i32
    %c0_i32_0 = arith.constant 0 : i32
    %c0_i32_1 = arith.constant 0 : i32
    return %c0_i32, %c0_i32_0 : i32, i32
  }
  func.func @transform_6(%arg0: i32) -> (i32, i32) {
    %c0_i32 = arith.constant 0 : i32
    %c0_i32_0 = arith.constant 0 : i32
    return %arg0, %c0_i32 : i32, i32
  }
}

</mosaic_0001>

<bundles_post_ra>
// kernel: dve_forward.1
= control target key start
LH: loop header
LB: loop body
LE: loop exit
PB: predicated region body
PF: predicated region fallthrough
CT: control target
= control target key end

     0   :  { %11 = vsyncpa [#allocation3], 0  ;;  %s1396_s0 = inlined_call_operand.vmem [shape: bf16[8,128], index: 0, kind: input, shape index: {}]   ;;  %s1397_s1 = inlined_call_operand.vmem [shape: bf16[8,128], index: 1, kind: input, shape index: {}]   ;;  %s1398_s2 = inlined_call_operand.vmem [shape: bf16[128,128], index: 2, kind: input, shape index: {}]   ;;  %s1399_s3 = inlined_call_operand.hbm [shape: bf16[5,128,128], index: 3, kind: input, shape index: {}]   ;;  %s1400_s4 = inlined_call_operand.hbm [shape: bf16[128,128], index: 4, kind: input, shape index: {}]   ;;  %s1401_s5 = inlined_call_operand.vmem [shape: f32[6,128], index: 5, kind: input, shape index: {}]   ;;  %s1402_s6 = inlined_call_operand.vmem [shape: f32[8,128], index: 6, kind: output, shape index: {}]  }
   0x1   :  { %12 = vsyncpa [#allocation5], 0  ;;  %s1209_s21 = smov [#allocation2]   ;;  %s1161_s25 = scalar_lea.hbm %s1399_s3, 5120 }
   0x2   :  { %s24_s22 = sshll.u32 %s1209_s21, 4  ;;  %p1162_p0 = scmp.ne.s32.totalorder %s1399_s3, %s1161_s25  ;;  %s25_s22 = int_to_ptr.vmem [resolvable:$true] %s24_s22 }
   0x3   :  { %p1165_p1 = scmp.lt.u32.totalorder %s1161_s25, %s1399_s3 }
   0x5   :  { %p1167_p2 = pnand %p1165_p1, %p1162_p0 }
   0x7   :  { %1170 = shalt.err (!%p1167_p2)
}
   0x8   :  { %s1171_s30 = scalar_lea.vmem %s25_s22, 5120  ;;  %p1176_p4 = scmp.lt.s32.totalorder %s25_s22, %s25_s22 }
   0x9   :  { %p1172_p3 = scmp.ne.s32.totalorder %s25_s22, %s1171_s30  ;;  %p1177_p5 = scmp.lt.s32.totalorder %s1171_s30, %s1171_s30 }
   0xb   :  { %p1178_p6 = por %p1177_p5, %p1176_p4 }
   0xd   :  { %p1179_p7 = pnand %p1178_p6, %p1172_p3 }
   0xf   :  { %1182 = shalt.err (!%p1179_p7)
}
  0x10   :  { %s1210_s7 = smov 64   ;;  %s1211_s8 = smov 4  }
  0x11   :  { %30 = dma.hbm_to_vmem [thread:$0]  %s1399_s3, 5120, %s25_s22, [#allocation3], %s1210_s7, %s1210_s7, %s1211_s8  }
  0x12   :  { %s1212_s11 = smov [#allocation4]   ;;  %s1183_s15 = scalar_lea.hbm %s1400_s4, 1024 }
  0x13   :  { %s36_s12 = sshll.u32 %s1212_s11, 4  ;;  %p1184_p8 = scmp.ne.s32.totalorder %s1400_s4, %s1183_s15  ;;  %s37_s12 = int_to_ptr.vmem [resolvable:$true] %s36_s12 }
  0x14   :  { %p1187_p9 = scmp.lt.u32.totalorder %s1183_s15, %s1400_s4 }
  0x16   :  { %p1189_p10 = pnand %p1187_p9, %p1184_p8 }
  0x18   :  { %1192 = shalt.err (!%p1189_p10)
}
  0x19   :  { %s1193_s20 = scalar_lea.vmem %s37_s12, 1024  ;;  %p1198_p12 = scmp.lt.s32.totalorder %s37_s12, %s37_s12 }
  0x1a   :  { %p1194_p11 = scmp.ne.s32.totalorder %s37_s12, %s1193_s20  ;;  %p1199_p13 = scmp.lt.s32.totalorder %s1193_s20, %s1193_s20 }
  0x1c   :  { %p1200_p0 = por %p1199_p13, %p1198_p12 }
  0x1e   :  { %p1201_p1 = pnand %p1200_p0, %p1194_p11 }
  0x20   :  { %1204 = shalt.err (!%p1201_p1)
}
  0x21   :  { %42 = dma.hbm_to_vmem [thread:$0]  %s1400_s4, 1024, %s37_s12, [#allocation5], %s1210_s7, %s1210_s7, %s1211_s8  }
  0x22   :  { %1205 = dma.done.wait [#allocation3], 5120  }
  0x23   :  { %1206 = vsyncadd [#allocation3], 4294962176 }
  0x24   :  { %1207 = dma.done.wait [#allocation5], 1024  }
  0x25   :  { %1208 = vsyncadd [#allocation5], 4294966272  ;;  %v1213_v0 = vmov 0.0   ;;  %vm1214_vm0 = vmmov 0   ;;  %v1101_v1 = vld [vmem:[%s1398_s2] sm:$0xff]   ;;  %v1102_v2 = vld [vmem:[%s1398_s2 + $0x8] sm:$0xff]   ;;  %v70_v24 = vlaneseq }
  0x26   :  { %955 = vmatprep.subr.bf16.mxu0 %v1213_v0  ;;  %971 = vmatprep.mubr.msk.bf16.mxu0 %vm1214_vm0, %v1213_v0  ;;  %v1103_v3 = vld [vmem:[%s1398_s2 + $0x10] sm:$0xff]   ;;  %v1109_v4 = vld [vmem:[#allocation2] sm:$0xff]   ;;  %v1104_v5 = vld [vmem:[%s1398_s2 + $0x18] sm:$0xff]  }
  0x27   :  { %975 = vmatprep.subr.bf16.mxu1 %v1213_v0  ;;  %991 = vmatprep.mubr.msk.bf16.mxu1 %vm1214_vm0, %v1213_v0  ;;  %v1110_v6 = vld [vmem:[#allocation2 + $0x8] sm:$0xff]   ;;  %v1105_v7 = vld [vmem:[%s1398_s2 + $0x20] sm:$0xff]   ;;  %v1111_v8 = vld [vmem:[#allocation2 + $0x10] sm:$0xff]   ;;  %v1331_v25 = vshrl.u32 %v70_v24, 7 }
  0x28   :  { %956 = vmatpush3.bf16.msra.mxu0 %v1101_v1  ;;  %976 = vmatpush3.bf16.msra.mxu1 %v1109_v4  ;;  %v1106_v9 = vld [vmem:[%s1398_s2 + $0x28] sm:$0xff]   ;;  %v1112_v10 = vld [vmem:[#allocation2 + $0x18] sm:$0xff]   ;;  %v1107_v11 = vld [vmem:[%s1398_s2 + $0x30] sm:$0xff]  }
  0x29   :  { %957 = vmatprep.subr.bf16.mxu0 %v1213_v0  ;;  %977 = vmatprep.subr.bf16.mxu1 %v1213_v0  ;;  %v1113_v12 = vld [vmem:[#allocation2 + $0x20] sm:$0xff]   ;;  %v1108_v13 = vld [vmem:[%s1398_s2 + $0x38] sm:$0xff]   ;;  %v1114_v14 = vld [vmem:[#allocation2 + $0x28] sm:$0xff]   ;;  %v72_v26 = vsub.s32 0, %v1331_v25  ;;  %v182_v44 = vsub.s32 1, %v1331_v25  ;;  %v293_v62 = vsub.s32 2, %v1331_v25 }
  0x2a   :  { %v53_v15 = vld [vmem:[%s1396_s0] sm:$0xf]  ;;  %v1115_v16 = vld [vmem:[#allocation2 + $0x30] sm:$0xff]   ;;  %v1116_v17 = vld [vmem:[#allocation2 + $0x38] sm:$0xff]   ;;  %v404_v24 = vsub.s32 3, %v1331_v25 }
  0x2b   :  { %v1117_v18 = vld [vmem:[#allocation2 + $0x40] sm:$0xff]   ;;  %v1118_v19 = vld [vmem:[#allocation2 + $0x48] sm:$0xff]   ;;  %v1119_v20 = vld [vmem:[#allocation2 + $0x50] sm:$0xff]  }
  0x2c   :  { %958 = vmatpush3.bf16.msra.mxu0 %v1102_v2  ;;  %978 = vmatpush3.bf16.msra.mxu1 %v1110_v6  ;;  %v1120_v21 = vld [vmem:[#allocation2 + $0x58] sm:$0xff]   ;;  %v1121_v22 = vld [vmem:[#allocation2 + $0x60] sm:$0xff]   ;;  %v1122_v23 = vld [vmem:[#allocation2 + $0x68] sm:$0xff]  }
  0x2d   :  { %959 = vmatprep.subr.bf16.mxu0 %v1213_v0  ;;  %979 = vmatprep.subr.bf16.mxu1 %v1213_v0  ;;  %v1337_v27 = vld [vmem:[%s1401_s5] sm:$0x3f]  ;;  %v1123_v36 = vld [vmem:[#allocation2 + $0x70] sm:$0xff]   ;;  %v1124_v37 = vld [vmem:[#allocation2 + $0x78] sm:$0xff]  }
  0x2e   :  { %v73_v28 = vrot.slane %v1337_v27, %v72_v26  ;;  %v1125_v38 = vld [vmem:[#allocation2 + $0x80] sm:$0xff]   ;;  %v1126_v39 = vld [vmem:[#allocation2 + $0x88] sm:$0xff]   ;;  %v1127_v40 = vld [vmem:[#allocation2 + $0x90] sm:$0xff]   ;;  %v183_v45 = vrot.slane %v1337_v27, %v182_v44  ;;  %v294_v63 = vrot.slane %v1337_v27, %v293_v62  ;;  %v405_v26 = vrot.slane %v1337_v27, %v404_v24 }
  0x2f   :  { %v1128_v41 = vld [vmem:[#allocation2 + $0x98] sm:$0xff]   ;;  %v1129_v42 = vld [vmem:[#allocation2 + $0xa0] sm:$0xff]   ;;  %v1130_v43 = vld [vmem:[#allocation2 + $0xa8] sm:$0xff]  }
  0x30   :  { %960 = vmatpush3.bf16.msra.mxu0 %v1103_v3  ;;  %980 = vmatpush3.bf16.msra.mxu1 %v1111_v8  ;;  %v1131_v53 = vld [vmem:[#allocation2 + $0xb0] sm:$0xff]   ;;  %v1132_v54 = vld [vmem:[#allocation2 + $0xb8] sm:$0xff]   ;;  %v1133_v55 = vld [vmem:[#allocation4] sm:$0xff]  }
  0x31   :  { %961 = vmatprep.subr.bf16.mxu0 %v1213_v0  ;;  %981 = vmatprep.subr.bf16.mxu1 %v1213_v0  ;;  %v1135_v56 = vld [vmem:[#allocation4 + $0x8] sm:$0xff]   ;;  %v1137_v57 = vld [vmem:[#allocation4 + $0x10] sm:$0xff]   ;;  %v1139_v58 = vld [vmem:[#allocation4 + $0x18] sm:$0xff]  }
  0x32   :  { %v1141_v59 = vld [vmem:[#allocation4 + $0x20] sm:$0xff]   ;;  %v1143_v60 = vld [vmem:[#allocation4 + $0x28] sm:$0xff]   ;;  %v1145_v61 = vld [vmem:[#allocation4 + $0x30] sm:$0xff]  }
  0x34   :  { %962 = vmatpush3.bf16.msra.mxu0 %v1104_v5  ;;  %982 = vmatpush3.bf16.msra.mxu1 %v1112_v10  ;;  %v1138_v10 = vld [vmem:[#allocation2 + $0xd0] sm:$0xff]  }
  0x35   :  { %963 = vmatprep.subr.bf16.mxu0 %v1213_v0  ;;  %983 = vmatprep.subr.bf16.mxu1 %v1213_v0 }
  0x38   :  { %964 = vmatpush3.bf16.msra.mxu0 %v1105_v7  ;;  %984 = vmatpush3.bf16.msra.mxu1 %v1113_v12  ;;  %v1134_v7 = vld [vmem:[#allocation2 + $0xc0] sm:$0xff]  }
  0x39   :  { %965 = vmatprep.subr.bf16.mxu0 %v1213_v0  ;;  %985 = vmatprep.subr.bf16.mxu1 %v1213_v0  ;;  %v1142_v12 = vld [vmem:[#allocation2 + $0xe0] sm:$0xff]  }
  0x3c   :  { %966 = vmatpush3.bf16.msra.mxu0 %v1106_v9  ;;  %986 = vmatpush3.bf16.msra.mxu1 %v1114_v14  ;;  %v1136_v9 = vld [vmem:[#allocation2 + $0xc8] sm:$0xff]   ;;  %v1146_v14 = vld [vmem:[#allocation2 + $0xf0] sm:$0xff]  }
  0x3d   :  { %967 = vmatprep.subr.bf16.mxu0 %v1213_v0  ;;  %987 = vmatprep.subr.bf16.mxu1 %v1213_v0 }
  0x40   :  { %968 = vmatpush3.bf16.msra.mxu0 %v1107_v11  ;;  %988 = vmatpush3.bf16.msra.mxu1 %v1115_v16  ;;  %v1140_v11 = vld [vmem:[#allocation2 + $0xd8] sm:$0xff]  }
  0x41   :  { %969 = vmatprep.subr.bf16.mxu0 %v1213_v0  ;;  %989 = vmatprep.subr.bf16.mxu1 %v1213_v0  ;;  %v1148_v16 = vld [vmem:[#allocation2 + $0xf8] sm:$0xff]  }
  0x44   :  { %970 = vmatpush3.bf16.msra.mxu0 %v1108_v13  ;;  %990 = vmatpush3.bf16.msra.mxu1 %v1116_v17  ;;  %v1144_v13 = vld [vmem:[#allocation2 + $0xe8] sm:$0xff]   ;;  %v513_v17 = vld [vmem:[%s1397_s1] sm:$0xf] }
  0x45   :  { %995 = vmatprep.subr.bf16.mxu0 %v1213_v0  ;;  %1015 = vmatprep.subr.bf16.mxu1 %v1213_v0 }
  0x47   :  { %972 = vmatmul.mubr.bf16.vlgmr.msra.gmra.mrb[0].mxu0 %v53_v15  ;;  %v1147_v15 = vld [vmem:[#allocation4 + $0x38] sm:$0xff]  }
  0x48   :  { %1011 = vmatprep.mubr.msk.bf16.mxu0 %vm1214_vm0, %v1213_v0  ;;  %996 = vmatpush3.bf16.msra.mxu0 %v1117_v18  ;;  %v1149_v18 = vld [vmem:[#allocation2 + $0x100] sm:$0xff]  }
  0x49   :  { %997 = vmatprep.subr.bf16.mxu0 %v1213_v0 }
  0x4c   :  { %998 = vmatpush3.bf16.msra.mxu0 %v1118_v19  ;;  %v1150_v19 = vld [vmem:[#allocation2 + $0x108] sm:$0xff]  }
  0x4d   :  { %999 = vmatprep.subr.bf16.mxu0 %v1213_v0 }
  0x50   :  { %1000 = vmatpush3.bf16.msra.mxu0 %v1119_v20  ;;  %v1151_v20 = vld [vmem:[#allocation2 + $0x110] sm:$0xff]  }
  0x51   :  { %1001 = vmatprep.subr.bf16.mxu0 %v1213_v0 }
  0x54   :  { %1002 = vmatpush3.bf16.msra.mxu0 %v1120_v21  ;;  %v1152_v21 = vld [vmem:[#allocation2 + $0x118] sm:$0xff]  }
  0x55   :  { %1003 = vmatprep.subr.bf16.mxu0 %v1213_v0 }
  0x58   :  { %1004 = vmatpush3.bf16.msra.mxu0 %v1121_v22  ;;  %v1153_v22 = vld [vmem:[#allocation2 + $0x120] sm:$0xff]  }
  0x59   :  { %1005 = vmatprep.subr.bf16.mxu0 %v1213_v0 }
  0x5c   :  { %1006 = vmatpush3.bf16.msra.mxu0 %v1122_v23  ;;  %v1154_v23 = vld [vmem:[#allocation2 + $0x128] sm:$0xff]  }
  0x5d   :  { %1007 = vmatprep.subr.bf16.mxu0 %v1213_v0 }
  0x60   :  { %1008 = vmatpush3.bf16.msra.mxu0 %v1123_v36 }
  0x61   :  { %1009 = vmatprep.subr.bf16.mxu0 %v1213_v0 }
  0x64   :  { %1010 = vmatpush3.bf16.msra.mxu0 %v1124_v37 }
  0x65   :  { %1035 = vmatprep.subr.bf16.mxu0 %v1213_v0 }
 0x11a   :  { %v156_v29 = vpop.f32.mrb[0].mxu0 }
 0x11b   :  { %v157_v30 = vadd.f32 %v156_v29, %v73_v28  ;;  %v973_v31 = vpop.f32.mrb[1].mxu0 }
 0x11c   :  { %v159_v32 = vpop.f32.mrb[2].mxu0 }
 0x11d   :  { %v162_v33 = vmax.f32 %v157_v30, 0.0  ;;  %v974_v34 = vpop.f32.mrb[3].mxu0 }
 0x11f   :  { %v163_v35 = vpack.c.bf16 %v162_v33, %v162_v33 }
 0x121   :  { %992 = vmatmul.mubr.bf16.vlgmr.msra.gmra.mrb[0].mxu1 %v163_v35 }
 0x122   :  { %1031 = vmatprep.mubr.msk.bf16.mxu1 %vm1214_vm0, %v1213_v0  ;;  %1016 = vmatpush3.bf16.msra.mxu1 %v1125_v38 }
 0x123   :  { %1017 = vmatprep.subr.bf16.mxu1 %v1213_v0 }
 0x126   :  { %1018 = vmatpush3.bf16.msra.mxu1 %v1126_v39  ;;  %v1155_v39 = vld [vmem:[#allocation2 + $0x130] sm:$0xff]  }
 0x127   :  { %1019 = vmatprep.subr.bf16.mxu1 %v1213_v0 }
 0x12a   :  { %1020 = vmatpush3.bf16.msra.mxu1 %v1127_v40  ;;  %v1156_v40 = vld [vmem:[#allocation2 + $0x138] sm:$0xff]  }
 0x12b   :  { %1021 = vmatprep.subr.bf16.mxu1 %v1213_v0 }
 0x12e   :  { %1022 = vmatpush3.bf16.msra.mxu1 %v1128_v41  ;;  %v708_v41 = vsub.s32 4, %v1331_v25 }
 0x12f   :  { %1023 = vmatprep.subr.bf16.mxu1 %v1213_v0 }
 0x132   :  { %1024 = vmatpush3.bf16.msra.mxu1 %v1129_v42  ;;  %v709_v42 = vrot.slane %v1337_v27, %v708_v41 }
 0x133   :  { %1025 = vmatprep.subr.bf16.mxu1 %v1213_v0 }
 0x136   :  { %1026 = vmatpush3.bf16.msra.mxu1 %v1130_v43 }
 0x137   :  { %1027 = vmatprep.subr.bf16.mxu1 %v1213_v0 }
 0x13a   :  { %1028 = vmatpush3.bf16.msra.mxu1 %v1131_v53 }
 0x13b   :  { %1029 = vmatprep.subr.bf16.mxu1 %v1213_v0 }
 0x13e   :  { %1030 = vmatpush3.bf16.msra.mxu1 %v1132_v54 }
 0x13f   :  { %1055 = vmatprep.subr.bf16.mxu1 %v1213_v0 }
 0x1f4   :  { %v266_v46 = vpop.f32.mrb[0].mxu1 }
 0x1f5   :  { %v267_v47 = vadd.f32 %v266_v46, %v183_v45  ;;  %v993_v48 = vpop.f32.mrb[1].mxu1 }
 0x1f6   :  { %v269_v49 = vpop.f32.mrb[2].mxu1 }
 0x1f7   :  { %v272_v50 = vmax.f32 %v267_v47, 0.0  ;;  %v994_v51 = vpop.f32.mrb[3].mxu1 }
 0x1f8   :  { %v732_v51 = vsub.s32 5, %v1331_v25 }
 0x1f9   :  { %v273_v52 = vpack.c.bf16 %v272_v50, %v272_v50 }
 0x1fb   :  { %1012 = vmatmul.mubr.bf16.vlgmr.msra.gmra.mrb[4].mxu0 %v273_v52  ;;  %v733_v52 = vrot.slane %v1337_v27, %v732_v51 }
 0x1fc   :  { %1051 = vmatprep.mubr.msk.bf16.mxu0 %vm1214_vm0, %v1213_v0  ;;  %1036 = vmatpush3.bf16.msra.mxu0 %v1133_v55 }
 0x1fd   :  { %1037 = vmatprep.subr.bf16.mxu0 %v1213_v0 }
 0x200   :  { %1038 = vmatpush3.bf16.msra.mxu0 %v1135_v56 }
 0x201   :  { %1039 = vmatprep.subr.bf16.mxu0 %v1213_v0 }
 0x204   :  { %1040 = vmatpush3.bf16.msra.mxu0 %v1137_v57 }
 0x205   :  { %1041 = vmatprep.subr.bf16.mxu0 %v1213_v0 }
 0x208   :  { %1042 = vmatpush3.bf16.msra.mxu0 %v1139_v58 }
 0x209   :  { %1043 = vmatprep.subr.bf16.mxu0 %v1213_v0 }
 0x20c   :  { %1044 = vmatpush3.bf16.msra.mxu0 %v1141_v59 }
 0x20d   :  { %1045 = vmatprep.subr.bf16.mxu0 %v1213_v0 }
 0x210   :  { %1046 = vmatpush3.bf16.msra.mxu0 %v1143_v60 }
 0x211   :  { %1047 = vmatprep.subr.bf16.mxu0 %v1213_v0 }
 0x214   :  { %1048 = vmatpush3.bf16.msra.mxu0 %v1145_v61 }
 0x215   :  { %1049 = vmatprep.subr.bf16.mxu0 %v1213_v0 }
 0x218   :  { %1050 = vmatpush3.bf16.msra.mxu0 %v1147_v15 }
 0x219   :  { %1075 = vmatprep.subr.bf16.mxu0 %v1213_v0 }
 0x21b   :  { %1052 = vmatmul.mubr.bf16.vlgmr.msra.gmra.mrb[8].mxu0 %v513_v17 }
 0x21c   :  { %1091 = vmatprep.mubr.msk.bf16.mxu0 %vm1214_vm0, %v1213_v0  ;;  %1076 = vmatpush3.bf16.msra.mxu0 %v1149_v18 }
 0x21d   :  { %1077 = vmatprep.subr.bf16.mxu0 %v1213_v0 }
 0x220   :  { %1078 = vmatpush3.bf16.msra.mxu0 %v1150_v19 }
 0x221   :  { %1079 = vmatprep.subr.bf16.mxu0 %v1213_v0 }
 0x224   :  { %1080 = vmatpush3.bf16.msra.mxu0 %v1151_v20 }
 0x225   :  { %1081 = vmatprep.subr.bf16.mxu0 %v1213_v0 }
 0x228   :  { %1082 = vmatpush3.bf16.msra.mxu0 %v1152_v21 }
 0x229   :  { %1083 = vmatprep.subr.bf16.mxu0 %v1213_v0 }
 0x22c   :  { %1084 = vmatpush3.bf16.msra.mxu0 %v1153_v22 }
 0x22d   :  { %1085 = vmatprep.subr.bf16.mxu0 %v1213_v0 }
 0x230   :  { %1086 = vmatpush3.bf16.msra.mxu0 %v1154_v23 }
 0x231   :  { %1087 = vmatprep.subr.bf16.mxu0 %v1213_v0 }
 0x234   :  { %1088 = vmatpush3.bf16.msra.mxu0 %v1155_v39 }
 0x235   :  { %1089 = vmatprep.subr.bf16.mxu0 %v1213_v0 }
 0x238   :  { %1090 = vmatpush3.bf16.msra.mxu0 %v1156_v40 }
 0x2ce   :  { %v377_v1 = vpop.f32.mrb[4].mxu0 }
 0x2cf   :  { %v378_v2 = vadd.f32 %v377_v1, %v294_v63  ;;  %v1013_v3 = vpop.f32.mrb[5].mxu0 }
 0x2d0   :  { %v380_v4 = vpop.f32.mrb[6].mxu0 }
 0x2d1   :  { %v383_v5 = vmax.f32 %v378_v2, 0.0  ;;  %v1014_v6 = vpop.f32.mrb[7].mxu0 }
 0x2d3   :  { %v384_v8 = vpack.c.bf16 %v383_v5, %v383_v5 }
 0x2d5   :  { %1032 = vmatmul.mubr.bf16.vlgmr.msra.gmra.mrb[4].mxu1 %v384_v8 }
 0x2d6   :  { %1056 = vmatpush3.bf16.msra.mxu1 %v1134_v7  ;;  %1071 = vmatprep.mubr.msk.bf16.mxu1 %vm1214_vm0, %v1213_v0 }
 0x2d7   :  { %1057 = vmatprep.subr.bf16.mxu1 %v1213_v0 }
 0x2da   :  { %1058 = vmatpush3.bf16.msra.mxu1 %v1136_v9 }
 0x2db   :  { %1059 = vmatprep.subr.bf16.mxu1 %v1213_v0 }
 0x2de   :  { %1060 = vmatpush3.bf16.msra.mxu1 %v1138_v10 }
 0x2df   :  { %1061 = vmatprep.subr.bf16.mxu1 %v1213_v0 }
 0x2e2   :  { %1062 = vmatpush3.bf16.msra.mxu1 %v1140_v11 }
 0x2e3   :  { %1063 = vmatprep.subr.bf16.mxu1 %v1213_v0 }
 0x2e6   :  { %1064 = vmatpush3.bf16.msra.mxu1 %v1142_v12 }
 0x2e7   :  { %1065 = vmatprep.subr.bf16.mxu1 %v1213_v0 }
 0x2ea   :  { %1066 = vmatpush3.bf16.msra.mxu1 %v1144_v13 }
 0x2eb   :  { %1067 = vmatprep.subr.bf16.mxu1 %v1213_v0 }
 0x2ee   :  { %1068 = vmatpush3.bf16.msra.mxu1 %v1146_v14  ;;  %v612_v35 = vpop.f32.mrb[8].mxu0 }
 0x2ef   :  { %1069 = vmatprep.subr.bf16.mxu1 %v1213_v0  ;;  %v1053_v36 = vpop.f32.mrb[9].mxu0 }
 0x2f0   :  { %v615_v37 = vpop.f32.mrb[10].mxu0 }
 0x2f1   :  { %v1054_v38 = vpop.f32.mrb[11].mxu0 }
 0x2f2   :  { %1070 = vmatpush3.bf16.msra.mxu1 %v1148_v16 }
 0x3a8   :  { %v488_v28 = vpop.f32.mrb[4].mxu1 }
 0x3a9   :  { %v489_v29 = vadd.f32 %v488_v28, %v405_v26  ;;  %v1033_v30 = vpop.f32.mrb[5].mxu1 }
 0x3aa   :  { %v491_v31 = vpop.f32.mrb[6].mxu1 }
 0x3ab   :  { %v494_v32 = vmax.f32 %v489_v29, 0.0  ;;  %v1034_v33 = vpop.f32.mrb[7].mxu1 }
 0x3ad   :  { %v495_v34 = vpack.c.bf16 %v494_v32, %v494_v32 }
 0x3af   :  { %1072 = vmatmul.mubr.bf16.vlgmr.msra.gmra.mrb[8].mxu1 %v495_v34 }
 0x482   :  { %v700_v43 = vpop.f32.mrb[8].mxu1 }
 0x483   :  { %v701_v44 = vadd.f32 %v700_v43, %v612_v35  ;;  %v1073_v45 = vpop.f32.mrb[9].mxu1 }
 0x484   :  { %v703_v46 = vpop.f32.mrb[10].mxu1 }
 0x485   :  { %v710_v47 = vadd.f32 %v709_v42, %v701_v44  ;;  %v1074_v48 = vpop.f32.mrb[11].mxu1 }
 0x487   :  { %v711_v49 = vmax.f32 %v710_v47, 0.0 }
 0x489   :  { %v712_v50 = vpack.c.bf16 %v711_v49, %v711_v49 }
 0x48b   :  { %1092 = vmatmul.mubr.bf16.vlgmr.msra.gmra.mrb[12].mxu0 %v712_v50 }
 0x55e   :  { %v816_v0 = vpop.f32.mrb[12].mxu0 }
 0x55f   :  { %v817_v53 = vadd.f32 %v816_v0, %v733_v52  ;;  %v1093_v54 = vpop.f32.mrb[13].mxu0 }
 0x560   :  { %v819_v55 = vpop.f32.mrb[14].mxu0 }
 0x561   :  { %v891_v56 = vmul.f32 -1.442695, %v817_v53  ;;  %v1094_v57 = vpop.f32.mrb[15].mxu0 }
 0x563   :  { %1157 = vpow2.f32 %v891_v56 }
 0x56d   :  { %v1158_v58 = vpop.eup %1157 }
 0x56e   :  { %v825_v59 = vadd.f32 1.0, %v1158_v58 }
 0x570   :  { %1159 = vrcp.f32 %v825_v59 }
 0x57a   :  { %v1160_v60 = vpop.eup %1159 }
 0x57b   :  { %828 = vst [vmem:[%s1402_s6] sm:$0xff] %v1160_v60 }
 0x57c   :  { %833 = vsyncpa [#allocation3], 1 }
 0x57d   :  { %834 = vsyncpa [#allocation5], 1 }

</bundles_post_ra>
